<compile_context>
chip_gen: v7x
topology: tpu7x:2x2x1
jax: 0.10.0
libtpu: 0.0.40
codegen_flags: <defaults>
</compile_context>

<pallas_src>
import functools
import math

import numpy as np
import jax
import jax.numpy as jnp
from jax.experimental import pallas as pl
from jax.experimental.pallas import tpu as pltpu

NEG_INF = -1e30
LN_EPS = 1e-5


# ----------------------------------------------------------------------------
# Per-chip tiling / VMEM budget
# ----------------------------------------------------------------------------
@functools.lru_cache(maxsize=None)
def _chip_budget():
    cap = 128 * 1024 * 1024
    try:
        info = pltpu.get_tpu_info()
        c = getattr(info, "vmem_capacity_bytes", None)
        if c:
            cap = int(c)
    except Exception:
        pass
    if cap <= 64 * 1024 * 1024:
        # v7x-class: leave headroom below the 64 MiB physical VMEM.
        return {"vmem": 48 * 1024 * 1024, "tm": 256, "tn": 512, "tkv": 512}
    # v5e / v6e: 128 MiB physical -> bigger tiles cut weight re-streaming.
    return {"vmem": 100 * 1024 * 1024, "tm": 512, "tn": 1024, "tkv": 512}


def _pick_tile(dim, preferred, align):
    """Largest tile <= preferred that is a multiple of `align` and divides
    `dim` (falls back to the full dim, which always satisfies BlockSpec rules)."""
    if dim <= preferred:
        return dim
    t = (preferred // align) * align
    while t >= align:
        if dim % t == 0:
            return t
        t -= align
    return dim


# ----------------------------------------------------------------------------
# Fused (optional-LayerNorm) matmul + bias + activation + residual kernel
# ----------------------------------------------------------------------------
def _fused_linear_kernel(*refs, do_ln, has_bias, add_residual, activation, eps):
    idx = 0
    x_ref = refs[idx]; idx += 1
    g_ref = b_ref = None
    if do_ln:
        g_ref, b_ref = refs[idx], refs[idx + 1]; idx += 2
    w_ref = refs[idx]; idx += 1
    bias_ref = None
    if has_bias:
        bias_ref = refs[idx]; idx += 1
    res_ref = None
    if add_residual:
        res_ref = refs[idx]; idx += 1
    o_ref = refs[idx]; idx += 1
    xn_ref = refs[idx] if do_ln else None

    if do_ln:
        # LayerNorm once per M-tile (j == 0), cached for all N tiles.
        @pl.when(pl.program_id(1) == 0)
        def _():
            x = x_ref[...].astype(jnp.float32)
            mu = jnp.mean(x, axis=-1, keepdims=True)
            xc = x - mu
            var = jnp.mean(xc * xc, axis=-1, keepdims=True)
            xn = xc * jax.lax.rsqrt(var + eps) * g_ref[...] + b_ref[...]
            xn_ref[...] = xn.astype(xn_ref.dtype)
        xm = xn_ref[...]
    else:
        xm = x_ref[...]                               # keep bf16, no upcast

    y = jnp.dot(xm.astype(w_ref.dtype), w_ref[...],
                preferred_element_type=jnp.float32)   # f32 accumulate
    if has_bias:
        y = y + bias_ref[...]
    if activation == "gelu":
        y = jax.nn.gelu(y, approximate=True)
    if add_residual:
        y = y + res_ref[...].astype(jnp.float32)
    o_ref[...] = y.astype(o_ref.dtype)


def pallas_fused_linear(x, w, bias=None, *, ln_g=None, ln_b=None, residual=None,
                        activation=None, out_dtype=jnp.bfloat16, eps=LN_EPS):
    """y = [residual +] act([LN](x) @ w + bias); tiled over (M, N), full K."""
    orig = x.shape
    K = orig[-1]
    M = int(np.prod(orig[:-1]))
    N = w.shape[1]
    x2 = x.reshape(M, K)
    do_ln = ln_g is not None
    has_bias = bias is not None
    add_res = residual is not None
    budget = _chip_budget()
    tm = _pick_tile(M, budget["tm"], 8)
    tn = _pick_tile(N, budget["tn"], 128)
    gm, gn = M // tm, N // tn

    inputs = [x2]
    in_specs = [pl.BlockSpec((tm, K), lambda i, j: (i, 0))]
    if do_ln:
        inputs += [ln_g.reshape(1, K).astype(jnp.float32),
                   ln_b.reshape(1, K).astype(jnp.float32)]
        in_specs += [pl.BlockSpec((1, K), lambda i, j: (0, 0)),
                     pl.BlockSpec((1, K), lambda i, j: (0, 0))]
    inputs.append(w)
    in_specs.append(pl.BlockSpec((K, tn), lambda i, j: (0, j)))
    if has_bias:
        inputs.append(bias.reshape(1, N).astype(jnp.float32))
        in_specs.append(pl.BlockSpec((1, tn), lambda i, j: (0, j)))
    if add_res:
        inputs.append(residual.reshape(M, N))
        in_specs.append(pl.BlockSpec((tm, tn), lambda i, j: (i, j)))

    scratch = [pltpu.VMEM((tm, K), x2.dtype)] if do_ln else []
    # LN cache requires the N axis to be sequential within a core.
    sem = ("parallel", "arbitrary") if do_ln else ("parallel", "parallel")
    out = pl.pallas_call(
        functools.partial(_fused_linear_kernel, do_ln=do_ln, has_bias=has_bias,
                          add_residual=add_res, activation=activation, eps=eps),
        out_shape=jax.ShapeDtypeStruct((M, N), out_dtype),
        grid_spec=pltpu.PrefetchScalarGridSpec(
            num_scalar_prefetch=0, grid=(gm, gn),
            in_specs=in_specs,
            out_specs=pl.BlockSpec((tm, tn), lambda i, j: (i, j)),
            scratch_shapes=scratch),
        compiler_params=pltpu.CompilerParams(
            dimension_semantics=sem, vmem_limit_bytes=budget["vmem"]),
    )(*inputs)
    return out.reshape(orig[:-1] + (N,))


# ----------------------------------------------------------------------------
# Fused LayerNorm + FFN (gelu) + residual kernel, F-tiled with f32 accumulator
# ----------------------------------------------------------------------------
def _ffn_kernel(x_ref, g_ref, b_ref, w1_ref, b1_ref, w2_ref, b2_ref, o_ref,
                xn_ref, acc_ref, *, eps):
    f = pl.program_id(1)

    @pl.when(f == 0)
    def _():
        x = x_ref[...].astype(jnp.float32)
        mu = jnp.mean(x, axis=-1, keepdims=True)
        xc = x - mu
        var = jnp.mean(xc * xc, axis=-1, keepdims=True)
        xn = xc * jax.lax.rsqrt(var + eps) * g_ref[...] + b_ref[...]
        xn_ref[...] = xn.astype(xn_ref.dtype)
        acc_ref[...] = jnp.zeros(acc_ref.shape, jnp.float32)

    h1 = jnp.dot(xn_ref[...], w1_ref[...],
                 preferred_element_type=jnp.float32) + b1_ref[...]
    h1 = jax.nn.gelu(h1, approximate=True)  # TODO(synk): exact erf GELU
    acc_ref[...] += jnp.dot(h1.astype(w2_ref.dtype), w2_ref[...],
                            preferred_element_type=jnp.float32)

    @pl.when(f == pl.num_programs(1) - 1)
    def _():
        y = acc_ref[...] + b2_ref[...] + x_ref[...].astype(jnp.float32)
        o_ref[...] = y.astype(o_ref.dtype)


def pallas_ffn_block(x, g, b, w1, b1, w2, b2, *, eps=LN_EPS):
    orig = x.shape
    D = orig[-1]
    F = w1.shape[1]
    M = int(np.prod(orig[:-1]))
    budget = _chip_budget()
    tm = _pick_tile(M, budget["tm"], 8)
    tf = _pick_tile(F, budget["tn"], 128)
    gm, gf = M // tm, F // tf
    out = pl.pallas_call(
        functools.partial(_ffn_kernel, eps=eps),
        out_shape=jax.ShapeDtypeStruct((M, D), x.dtype),
        grid_spec=pltpu.PrefetchScalarGridSpec(
            num_scalar_prefetch=0, grid=(gm, gf),
            in_specs=[
                pl.BlockSpec((tm, D), lambda i, f: (i, 0)),
                pl.BlockSpec((1, D), lambda i, f: (0, 0)),
                pl.BlockSpec((1, D), lambda i, f: (0, 0)),
                pl.BlockSpec((D, tf), lambda i, f: (0, f)),
                pl.BlockSpec((1, tf), lambda i, f: (0, f)),
                pl.BlockSpec((tf, D), lambda i, f: (f, 0)),
                pl.BlockSpec((1, D), lambda i, f: (0, 0)),
            ],
            out_specs=pl.BlockSpec((tm, D), lambda i, f: (i, 0)),
            scratch_shapes=[pltpu.VMEM((tm, D), x.dtype),
                            pltpu.VMEM((tm, D), jnp.float32)]),
        compiler_params=pltpu.CompilerParams(
            dimension_semantics=("parallel", "arbitrary"),
            vmem_limit_bytes=budget["vmem"]),
    )(x.reshape(M, D),
      g.reshape(1, D).astype(jnp.float32), b.reshape(1, D).astype(jnp.float32),
      w1, b1.reshape(1, F).astype(jnp.float32),
      w2, b2.reshape(1, D).astype(jnp.float32))
    return out.reshape(orig)


# ----------------------------------------------------------------------------
# GQA attention: grid (B, KV, kv_tiles), group heads batched per step,
# flash-style online softmax over the KV axis, single store per step.
# ----------------------------------------------------------------------------
def _flash_attn_step(q, k, v, allow, t, m_sc, l_sc, acc_sc, o_ref, *, scale):
    @pl.when(t == 0)
    def _():
        m_sc[...] = jnp.full(m_sc.shape, NEG_INF, jnp.float32)
        l_sc[...] = jnp.zeros(l_sc.shape, jnp.float32)
        acc_sc[...] = jnp.zeros(acc_sc.shape, jnp.float32)

    # (group*Sq, Dh) @ (Dh, tk) -> (group*Sq, tk), f32 accumulate on the MXU.
    s = jax.lax.dot_general(q, k, (((1,), (1,)), ((), ())),
                            preferred_element_type=jnp.float32) * scale
    if allow is not None:
        s = jnp.where(allow > 0.0, s, NEG_INF)
    m_prev = m_sc[...]
    m_new = jnp.maximum(m_prev, jnp.max(s, axis=-1, keepdims=True))
    alpha = jnp.exp(m_prev - m_new)
    p = jnp.exp(s - m_new)
    if allow is not None:
        p = p * allow                       # fully-masked rows stay exactly zero
    l_sc[...] = alpha * l_sc[...] + jnp.sum(p, axis=-1, keepdims=True)
    acc_sc[...] = alpha * acc_sc[...] + jnp.dot(
        p.astype(v.dtype), v, preferred_element_type=jnp.float32)
    m_sc[...] = m_new

    @pl.when(t == pl.num_programs(2) - 1)
    def _():
        inv = pl.reciprocal(jnp.maximum(l_sc[...], 1e-30), approx=True)
        o_ref[0, 0] = (acc_sc[...] * inv).astype(o_ref.dtype)


def _attn_dense_mask_kernel(q_ref, k_ref, v_ref, m_ref, o_ref,
                            m_sc, l_sc, acc_sc, *, scale, group, causal):
    t = pl.program_id(2)
    q = q_ref[0, 0]                      # (group*Sq, Dh)
    k = k_ref[0, 0]                      # (tk, Dh)
    v = v_ref[0, 0]
    tk = k.shape[0]
    sq = m_ref.shape[1]
    allow = (m_ref[0] > 0.5).astype(jnp.float32)          # (Sq, tk), 1 = allow
    if causal:
        row = jax.lax.broadcasted_iota(jnp.int32, (sq, tk), 0)
        col = jax.lax.broadcasted_iota(jnp.int32, (sq, tk), 1) + t * tk
        allow = allow * (row >= col).astype(jnp.float32)
    if group > 1:
        allow = jnp.concatenate([allow] * group, axis=0)   # (group*Sq, tk)
    _flash_attn_step(q, k, v, allow, t, m_sc, l_sc, acc_sc, o_ref, scale=scale)


def _attn_lens_kernel(lens_ref, q_ref, k_ref, v_ref, o_ref,
                      m_sc, l_sc, acc_sc, *, scale, group, causal):
    b = pl.program_id(0)
    t = pl.program_id(2)
    q = q_ref[0, 0]
    k = k_ref[0, 0]
    v = v_ref[0, 0]
    gs = q.shape[0]
    tk = k.shape[0]
    sq = gs // group
    col = jax.lax.broadcasted_iota(jnp.int32, (gs, tk), 1) + t * tk
    allow = (col < lens_ref[b]).astype(jnp.float32)        # key-padding mask
    if causal:
        rowq = jax.lax.broadcasted_iota(jnp.int32, (sq, tk), 0)
        colq = jax.lax.broadcasted_iota(jnp.int32, (sq, tk), 1) + t * tk
        cm = (rowq >= colq).astype(jnp.float32)
        if group > 1:
            cm = jnp.concatenate([cm] * group, axis=0)
        allow = allow * cm
    _flash_attn_step(q, k, v, allow, t, m_sc, l_sc, acc_sc, o_ref, scale=scale)


def _split_q_heads(q, B, S, nkv, group, hd):
    # (B, S, H*hd) -> (B, KV, group*S, hd)   [XLA layout plumbing]
    q = q.reshape(B, S, nkv, group, hd)
    q = jnp.transpose(q, (0, 2, 3, 1, 4))
    return q.reshape(B, nkv, group * S, hd)


def _split_kv_heads(x, B, S, nkv, hd):
    # (B, S, KV*hd) -> (B, KV, S, hd)
    x = x.reshape(B, S, nkv, hd)
    return jnp.transpose(x, (0, 2, 1, 3))


def _merge_heads(o, B, S, nkv, group, hd):
    # (B, KV, group*S, hd) -> (B, S, H*hd)
    o = o.reshape(B, nkv, group, S, hd)
    o = jnp.transpose(o, (0, 3, 1, 2, 4))
    return o.reshape(B, S, nkv * group * hd)


def _attention_call(qh, kh, vh, *, group, head_dim, mask=None, kv_lens=None,
                    causal=False):
    B, KV, GS, hd = qh.shape
    Sk = kh.shape[2]
    Sq = GS // group
    scale = 1.0 / math.sqrt(head_dim)
    budget = _chip_budget()
    tk = _pick_tile(Sk, budget["tkv"], 128)
    nkt = Sk // tk
    scratch = [pltpu.VMEM((GS, 1), jnp.float32),
               pltpu.VMEM((GS, 1), jnp.float32),
               pltpu.VMEM((GS, hd), jnp.float32)]
    out_shape = jax.ShapeDtypeStruct((B, KV, GS, hd), qh.dtype)
    cp = pltpu.CompilerParams(
        dimension_semantics=("parallel", "parallel", "arbitrary"),
        vmem_limit_bytes=budget["vmem"])

    if mask is not None:
        grid_spec = pltpu.PrefetchScalarGridSpec(
            num_scalar_prefetch=0,
            grid=(B, KV, nkt),
            in_specs=[
                pl.BlockSpec((1, 1, GS, hd), lambda b, g, t: (b, g, 0, 0)),
                pl.BlockSpec((1, 1, tk, hd), lambda b, g, t: (b, g, t, 0)),
                pl.BlockSpec((1, 1, tk, hd), lambda b, g, t: (b, g, t, 0)),
                pl.BlockSpec((1, Sq, tk), lambda b, g, t: (b, 0, t)),
            ],
            out_specs=pl.BlockSpec((1, 1, GS, hd), lambda b, g, t: (b, g, 0, 0)),
            scratch_shapes=scratch)
        return pl.pallas_call(
            functools.partial(_attn_dense_mask_kernel, scale=scale, group=group,
                              causal=causal),
            out_shape=out_shape, grid_spec=grid_spec, compiler_params=cp,
        )(qh, kh, vh, mask)

    if kv_lens is None:
        kv_lens = jnp.full((B,), Sk, jnp.int32)
    grid_spec = pltpu.PrefetchScalarGridSpec(
        num_scalar_prefetch=1,
        grid=(B, KV, nkt),
        in_specs=[
            pl.BlockSpec((1, 1, GS, hd), lambda b, g, t, lens: (b, g, 0, 0)),
            pl.BlockSpec((1, 1, tk, hd), lambda b, g, t, lens: (b, g, t, 0)),
            pl.BlockSpec((1, 1, tk, hd), lambda b, g, t, lens: (b, g, t, 0)),
        ],
        out_specs=pl.BlockSpec((1, 1, GS, hd), lambda b, g, t, lens: (b, g, 0, 0)),
        scratch_shapes=scratch)
    return pl.pallas_call(
        functools.partial(_attn_lens_kernel, scale=scale, group=group,
                          causal=causal),
        out_shape=out_shape, grid_spec=grid_spec, compiler_params=cp,
    )(jnp.asarray(kv_lens, jnp.int32), qh, kh, vh)


def pallas_self_attention(qkv, *, nhead, num_kv, head_dim, mask=None,
                          kv_lens=None, causal=False):
    """qkv: (B, S, (nhead + 2*num_kv) * head_dim) packed Q|K|V on lanes."""
    B, S, _ = qkv.shape
    group = nhead // num_kv
    q_dim = nhead * head_dim
    kv_dim = num_kv * head_dim
    q = qkv[..., :q_dim]
    k = qkv[..., q_dim:q_dim + kv_dim]
    v = qkv[..., q_dim + kv_dim:]
    qh = _split_q_heads(q, B, S, num_kv, group, head_dim)
    kh = _split_kv_heads(k, B, S, num_kv, head_dim)
    vh = _split_kv_heads(v, B, S, num_kv, head_dim)
    o = _attention_call(qh, kh, vh, group=group, head_dim=head_dim,
                        mask=mask, kv_lens=kv_lens, causal=causal)
    return _merge_heads(o, B, S, num_kv, group, head_dim)


def pallas_cross_attention(q, kv, *, nhead, num_kv, head_dim, kv_lens=None):
    """q: (B, Sq, nhead*head_dim); kv: (B, Sk, 2*num_kv*head_dim) packed K|V."""
    B, Sq, _ = q.shape
    Sk = kv.shape[1]
    group = nhead // num_kv
    kv_dim = num_kv * head_dim
    k = kv[..., :kv_dim]
    v = kv[..., kv_dim:]
    qh = _split_q_heads(q, B, Sq, num_kv, group, head_dim)
    kh = _split_kv_heads(k, B, Sk, num_kv, head_dim)
    vh = _split_kv_heads(v, B, Sk, num_kv, head_dim)
    o = _attention_call(qh, kh, vh, group=group, head_dim=head_dim,
                        kv_lens=kv_lens)
    return _merge_heads(o, B, Sq, num_kv, group, head_dim)


# ----------------------------------------------------------------------------
# Masked average pooling (per-row grid, lengths via scalar prefetch)
# ----------------------------------------------------------------------------
def _avgpool_kernel(lens_ref, mem_ref, o_ref):
    i = pl.program_id(0)
    mem = mem_ref[0].astype(jnp.float32)                  # (L, D)
    L = mem.shape[0]
    pos = jax.lax.broadcasted_iota(jnp.int32, (L, 1), 0)
    valid = (pos < lens_ref[i]).astype(jnp.float32)       # (L, 1)
    s = jnp.sum(mem * valid, axis=0, keepdims=True)       # (1, D)
    cnt = jnp.maximum(lens_ref[i], 1).astype(jnp.float32)
    o_ref[0] = s / cnt


def pallas_avg_pool(memory, lens):
    Ns, L, D = memory.shape
    budget = _chip_budget()
    out = pl.pallas_call(
        _avgpool_kernel,
        out_shape=jax.ShapeDtypeStruct((Ns, 1, D), jnp.float32),
        grid_spec=pltpu.PrefetchScalarGridSpec(
            num_scalar_prefetch=1, grid=(Ns,),
            in_specs=[pl.BlockSpec((1, L, D), lambda i, lens: (i, 0, 0))],
            out_specs=pl.BlockSpec((1, 1, D), lambda i, lens: (i, 0, 0))),
        compiler_params=pltpu.CompilerParams(
            dimension_semantics=("parallel",),
            vmem_limit_bytes=budget["vmem"]),
    )(jnp.asarray(lens, jnp.int32), memory)
    return out.reshape(Ns, D)


# ----------------------------------------------------------------------------
# Transformer layers (glue around the fused Pallas kernels)
# ----------------------------------------------------------------------------
def encoder_layer(x, p, nhead, num_kv, head_dim, *, mask=None, kv_lens=None):
    qkv = pallas_fused_linear(x, p["wqkv"], p["bqkv"],
                              ln_g=p["ln1_g"], ln_b=p["ln1_b"])
    attn = pallas_self_attention(qkv, nhead=nhead, num_kv=num_kv,
                                 head_dim=head_dim, mask=mask, kv_lens=kv_lens)
    x = pallas_fused_linear(attn, p["wo"], p["bo"], residual=x)
    x = pallas_ffn_block(x, p["ln2_g"], p["ln2_b"],
                         p["ff1_w"], p["ff1_b"], p["ff2_w"], p["ff2_b"])
    return x


def decoder_layer(x, mem, p, nhead, num_kv, head_dim, *, mem_lens=None):
    # causal self-attention
    qkv = pallas_fused_linear(x, p["wqkv"], p["bqkv"],
                              ln_g=p["ln1_g"], ln_b=p["ln1_b"])
    attn = pallas_self_attention(qkv, nhead=nhead, num_kv=num_kv,
                                 head_dim=head_dim, causal=True)
    x = pallas_fused_linear(attn, p["wo"], p["bo"], residual=x)
    # cross-attention over memory (key-padding from lengths, in-kernel)
    q = pallas_fused_linear(x, p["cwq"], p["cbq"],
                            ln_g=p["ln2_g"], ln_b=p["ln2_b"])
    kv = pallas_fused_linear(mem, p["cwkv"], p["cbkv"])
    attn = pallas_cross_attention(q, kv, nhead=nhead, num_kv=num_kv,
                                  head_dim=head_dim, kv_lens=mem_lens)
    x = pallas_fused_linear(attn, p["cwo"], p["cbo"], residual=x)
    # FFN
    x = pallas_ffn_block(x, p["ln3_g"], p["ln3_b"],
                         p["ff1_w"], p["ff1_b"], p["ff2_w"], p["ff2_b"])
    return x


# ----------------------------------------------------------------------------
# Static-metadata glue: positional encoding, pooling segments, regrouping
# ----------------------------------------------------------------------------
def sinusoidal_positional_encoding(seq_length, d_model):
    pos = np.arange(seq_length, dtype=np.float32)[:, None]
    i = np.arange(d_model // 2, dtype=np.float32)[None, :]
    angles = pos / np.power(10000.0, 2.0 * i / d_model)
    pe = np.zeros((seq_length, d_model), np.float32)
    pe[:, 0::2] = np.sin(angles)
    pe[:, 1::2] = np.cos(angles)
    return jnp.asarray(pe)


def build_word_pool_segments(word_boundaries, B, S):
    """Per-token segment id + 1/span_len weight for mean word pooling.
    Tokens outside any word span go to the dropped segment `n_words`."""
    # TODO(synk): WordPooling internals unspecified; mean pooling per span assumed.
    seg = np.full((B * S,), -1, np.int32)
    wgt = np.zeros((B * S,), np.float32)
    w = 0
    for b, spans in enumerate(word_boundaries):
        for (s, e) in spans:
            seg[b * S + s: b * S + e] = w
            wgt[b * S + s: b * S + e] = 1.0 / max(e - s, 1)
            w += 1
    seg[seg < 0] = w
    return seg, wgt, w


def compute_unpad_metadata(sequence_ids):
    """Static regroup metadata: (Ns,L) gather indices (pad -> zero row), per-row
    valid lengths, and row-major flat indices of valid (Ns*L) slots."""
    seq_ids = np.asarray(sequence_ids)
    uniq = np.unique(seq_ids)
    ns = len(uniq)
    counts = np.array([int(np.sum(seq_ids == u)) for u in uniq], np.int32)
    max_len = int(counts.max())
    total = seq_ids.shape[0]
    gather_idx = np.full((ns, max_len), total, np.int32)
    flat_valid = []
    for si, u in enumerate(uniq):
        widx = np.nonzero(seq_ids == u)[0]
        gather_idx[si, : len(widx)] = widx
        flat_valid.extend(si * max_len + j for j in range(len(widx)))
    return gather_idx, counts, np.asarray(flat_valid, np.int32)


def get_eos_mask(sequence_ids):
    seq_ids = np.asarray(sequence_ids)
    m = seq_ids[:-1] != seq_ids[1:]
    m = np.concatenate([m, np.array([True])])
    return ~m                                           # True = keep


# ----------------------------------------------------------------------------
# Parameter init (deterministic, synthetic; bf16 weights, f32 biases/LN)
# ----------------------------------------------------------------------------
def _w(key, fan_in, fan_out):
    return (jax.random.normal(key, (fan_in, fan_out), jnp.float32)
            / math.sqrt(fan_in)).astype(jnp.bfloat16)


def _init_encoder_layer(key, d_model, nhead, num_kv, head_dim, ffn):
    ks = jax.random.split(key, 4)
    q_dim = nhead * head_dim
    kv_dim = num_kv * head_dim
    return {
        "ln1_g": jnp.ones((d_model,), jnp.float32),
        "ln1_b": jnp.zeros((d_model,), jnp.float32),
        "wqkv": _w(ks[0], d_model, q_dim + 2 * kv_dim),
        "bqkv": jnp.zeros((q_dim + 2 * kv_dim,), jnp.float32),
        "wo": _w(ks[1], q_dim, d_model),
        "bo": jnp.zeros((d_model,), jnp.float32),
        "ln2_g": jnp.ones((d_model,), jnp.float32),
        "ln2_b": jnp.zeros((d_model,), jnp.float32),
        "ff1_w": _w(ks[2], d_model, ffn),
        "ff1_b": jnp.zeros((ffn,), jnp.float32),
        "ff2_w": _w(ks[3], ffn, d_model),
        "ff2_b": jnp.zeros((d_model,), jnp.float32),
    }


def _init_decoder_layer(key, d_model, nhead, num_kv, head_dim, ffn):
    ks = jax.random.split(key, 8)
    q_dim = nhead * head_dim
    kv_dim = num_kv * head_dim
    return {
        "ln1_g": jnp.ones((d_model,), jnp.float32),
        "ln1_b": jnp.zeros((d_model,), jnp.float32),
        "wqkv": _w(ks[0], d_model, q_dim + 2 * kv_dim),
        "bqkv": jnp.zeros((q_dim + 2 * kv_dim,), jnp.float32),
        "wo": _w(ks[1], q_dim, d_model),
        "bo": jnp.zeros((d_model,), jnp.float32),
        "ln2_g": jnp.ones((d_model,), jnp.float32),
        "ln2_b": jnp.zeros((d_model,), jnp.float32),
        "cwq": _w(ks[2], d_model, q_dim),
        "cbq": jnp.zeros((q_dim,), jnp.float32),
        "cwkv": _w(ks[3], d_model, 2 * kv_dim),
        "cbkv": jnp.zeros((2 * kv_dim,), jnp.float32),
        "cwo": _w(ks[4], q_dim, d_model),
        "cbo": jnp.zeros((d_model,), jnp.float32),
        "ln3_g": jnp.ones((d_model,), jnp.float32),
        "ln3_b": jnp.zeros((d_model,), jnp.float32),
        "ff1_w": _w(ks[5], d_model, ffn),
        "ff1_b": jnp.zeros((ffn,), jnp.float32),
        "ff2_w": _w(ks[6], ffn, d_model),
        "ff2_b": jnp.zeros((d_model,), jnp.float32),
    }


def init_params(key, cfg):
    ks = jax.random.split(key, 5)
    d, hd, ff = cfg["d_model"], cfg["head_dim"], cfg["dim_feedforward"]
    enc1 = [_init_encoder_layer(k, d, cfg["nhead"], cfg["kv1"], hd, ff)
            for k in jax.random.split(ks[1], cfg["num_encoder1_layers"])]
    enc2 = [_init_encoder_layer(k, d, cfg["nhead"], cfg["kv2"], hd, ff)
            for k in jax.random.split(ks[2], cfg["num_encoder2_layers"])]
    dec = [_init_decoder_layer(k, d, cfg["nhead"], cfg["kvd"], hd, ff)
           for k in jax.random.split(ks[3], cfg["num_decoder_layers"])]
    # NOTE: self.word_decoder is never used by the reference forward; not built.
    return {
        "embedding": (jax.random.normal(ks[0], (cfg["vocab_size"], d), jnp.float32)
                      * 0.02).astype(jnp.bfloat16),
        "encoder1": enc1, "encoder2": enc2, "decoder": dec,
        "out_w": _w(ks[4], d, cfg["vocab_size"]),
        "out_b": jnp.zeros((cfg["vocab_size"],), jnp.float32),
    }


# ----------------------------------------------------------------------------
# Encodzall forward
# ----------------------------------------------------------------------------
def encodzall_forward(params, cfg, x, sequence_ids, seq_target_ids=None,
                      seq_key_padding_mask=None, word_target_ids=None,
                      word_key_padding_mask=None, attention_mask=None,
                      word_boundaries=None, return_embeddings_only=False):
    # word_key_padding_mask is accepted for API parity but (as in the reference
    # forward) never used.
    d = cfg["d_model"]
    nhead, hd = cfg["nhead"], cfg["head_dim"]
    emb = params["embedding"]
    B, S = x.shape

    if word_boundaries is None:
        raise ValueError("word_boundaries must be provided")
    if attention_mask is None:
        raise ValueError("attention_mask must be provided")

    # ---- embedding + encoder1 (arbitrary boolean mask passed as bf16 0/1) ----
    embedded = emb[x]                                              # (B, S, D) bf16
    mask_bf16 = jnp.asarray(attention_mask).astype(jnp.bfloat16)   # 1.0 = allow
    h = embedded
    for lp in params["encoder1"]:
        h = encoder_layer(h, lp, nhead, cfg["kv1"], hd, mask=mask_bf16)
    enc1_out = h

    # ---- word pooling: weighted segment-sum (O(B*S*D)), f32 accumulation ----
    seg, wgt, n_words = build_word_pool_segments(word_boundaries, B, S)
    flat = enc1_out.reshape(B * S, d).astype(jnp.float32) * jnp.asarray(wgt)[:, None]
    pooled = jax.ops.segment_sum(flat, jnp.asarray(seg), num_segments=n_words + 1)
    pooled = pooled[:n_words].astype(jnp.bfloat16)                 # (W, D)

    # ---- unpad / regroup by sub-sequence id: one static gather ----
    gather_idx, counts, flat_valid = compute_unpad_metadata(sequence_ids)
    ns, L = gather_idx.shape
    pooled_pad = jnp.concatenate([pooled, jnp.zeros((1, d), pooled.dtype)], axis=0)
    enc1_unpadded = pooled_pad[jnp.asarray(gather_idx)]            # (Ns, L, D)
    mem_lens = jnp.asarray(counts, jnp.int32)                      # (Ns,)

    # ---- encoder2 (key-padding mask generated in-kernel from lengths) ----
    h = enc1_unpadded
    for lp in params["encoder2"]:
        h = encoder_layer(h, lp, nhead, cfg["kv2"], hd, kv_lens=mem_lens)
    memory = h                                                     # (Ns, L, D)

    # ---- masked average pooling -> embeddings ----
    embeddings = pallas_avg_pool(memory, mem_lens)                 # (Ns, D) f32
    if return_embeddings_only:
        return embeddings

    # ---- sequence reconstruction path ----
    seq_logits = None
    if seq_target_ids is not None:
        seq_tgt_emb = emb[seq_target_ids]                          # (Ns, Tt, D)
        mem_pos = sinusoidal_positional_encoding(L, d).astype(memory.dtype)
        dec_mem = memory + mem_pos[None]
        cross_lens = mem_lens if seq_key_padding_mask is not None else None
        h = seq_tgt_emb
        for lp in params["decoder"]:
            h = decoder_layer(h, dec_mem, lp, nhead, cfg["kvd"], hd,
                              mem_lens=cross_lens)
        seq_logits = pallas_fused_linear(h, params["out_w"], params["out_b"],
                                         out_dtype=jnp.float32)
        seq_logits = seq_logits[:, :-1, :]

    # ---- word reconstruction path (reference uses self.decoder here) ----
    word_logits = None
    if word_target_ids is not None:
        word_tgt_emb = emb[word_target_ids]                        # (Nw, Tw, D)
        eos_keep = get_eos_mask(sequence_ids)                      # True = keep
        keep_flat = flat_valid[eos_keep]
        word_memory = memory.reshape(-1, d)[jnp.asarray(keep_flat)][:, None, :]
        h = word_tgt_emb
        for lp in params["decoder"]:
            h = decoder_layer(h, word_memory, lp, nhead, cfg["kvd"], hd,
                              mem_lens=None)
        word_logits = pallas_fused_linear(h, params["out_w"], params["out_b"],
                                          out_dtype=jnp.float32)
        word_logits = word_logits[:, :-1, :]

    return embeddings, seq_logits, word_logits


# ----------------------------------------------------------------------------
# Main
# ----------------------------------------------------------------------------
if __name__ == "__main__":
    CFG = dict(
        vocab_size=64, d_model=32, nhead=4, head_dim=8, dim_feedforward=64,
        kv1=1,   # num_kv_heads_encoder1 = nhead // 4
        kv2=2,   # num_kv_heads_encoder2 = nhead // 2
        kvd=2,   # num_kv_heads_decoder  = nhead // 2
        num_encoder1_layers=2, num_encoder2_layers=1, num_decoder_layers=1,
    )

    key = jax.random.PRNGKey(0)
    k_params, k_x, k_seq, k_word = jax.random.split(key, 4)
    params = init_params(k_params, CFG)

    B, S = 2, 16
    x = jax.random.randint(k_x, (B, S), 0, CFG["vocab_size"], dtype=jnp.int32)
    # 4 words per row (static boundaries) -> 8 pooled words total
    word_boundaries = [[(0, 4), (4, 8), (8, 12), (12, 16)],
                       [(0, 4), (4, 8), (8, 12), (12, 16)]]
    # one sub-sequence id per pooled word (contiguous, sorted)
    sequence_ids = np.array([0, 0, 0, 1, 1, 2, 2, 2], dtype=np.int32)

    attention_mask = jnp.ones((B, S, S), dtype=bool)          # True = allow

    Ns, Tt = 3, 8
    seq_target_ids = jax.random.randint(k_seq, (Ns, Tt), 0, CFG["vocab_size"],
                                        dtype=jnp.int32)
    seq_key_padding_mask = np.zeros((Ns, Tt), dtype=bool)     # no padding

    eos_keep = get_eos_mask(sequence_ids)
    Nkept, Tw = int(eos_keep.sum()), 6
    word_target_ids = jax.random.randint(k_word, (Nkept, Tw), 0,
                                         CFG["vocab_size"], dtype=jnp.int32)
    word_key_padding_mask = np.zeros((Nkept, Tw), dtype=bool)

    embeddings, seq_logits, word_logits = encodzall_forward(
        params, CFG, x, sequence_ids,
        seq_target_ids=seq_target_ids,
        seq_key_padding_mask=seq_key_padding_mask,
        word_target_ids=word_target_ids,
        word_key_padding_mask=word_key_padding_mask,
        attention_mask=attention_mask,
        word_boundaries=word_boundaries,
    )
    jax.block_until_ready((embeddings, seq_logits, word_logits))

    assert embeddings.shape == (Ns, CFG["d_model"])
    assert seq_logits.shape == (Ns, Tt - 1, CFG["vocab_size"])
    assert word_logits.shape == (Nkept, Tw - 1, CFG["vocab_size"])
    assert bool(jnp.all(jnp.isfinite(embeddings)))
    assert bool(jnp.all(jnp.isfinite(seq_logits)))
    assert bool(jnp.all(jnp.isfinite(word_logits)))
    print("KERNEL_OK")
</pallas_src>

<mosaic_0001>
module attributes {stable_mosaic.version = 11 : i64} {
  func.func @_fused_linear_kernel(%arg0: i32, %arg1: i32, %arg2: memref<32x32xbf16, #tpu.memory_space<vmem>>, %arg3: memref<1x32xf32, #tpu.memory_space<vmem>>, %arg4: memref<1x32xf32, #tpu.memory_space<vmem>>, %arg5: memref<32x48xbf16, #tpu.memory_space<vmem>>, %arg6: memref<1x48xf32, #tpu.memory_space<vmem>>, %arg7: memref<32x48xbf16, #tpu.memory_space<vmem>>, %arg8: memref<32x32xbf16, #tpu.memory_space<vmem>>) attributes {dimension_semantics = [#tpu.dimension_semantics<parallel>, #tpu.dimension_semantics<arbitrary>], iteration_bounds = array<i64: 1, 1>, scalar_prefetch = 0 : i64, scratch_operands = 1 : i64, tpu.core_type = #tpu.core_type<tc>, window_params = [{transform_indices = @transform_0, window_bounds = array<i64: 32, 32>}, {pipeline_mode = #tpu.pipeline_mode<synchronous>, transform_indices = @transform_1, window_bounds = array<i64: 1, 32>}, {pipeline_mode = #tpu.pipeline_mode<synchronous>, transform_indices = @transform_2, window_bounds = array<i64: 1, 32>}, {transform_indices = @transform_3, window_bounds = array<i64: 32, 48>}, {transform_indices = @transform_4, window_bounds = array<i64: 1, 48>}, {transform_indices = @transform_5, window_bounds = array<i64: 32, 48>}]} {
    %c0_i32 = arith.constant 0 : i32
    %0 = arith.cmpi eq, %arg1, %c0_i32 : i32
    %1 = arith.extui %0 : i1 to i32
    %c0_i32_0 = arith.constant 0 : i32
    %2 = arith.cmpi ne, %1, %c0_i32_0 : i32
    scf.if %2 {
      %c0_8 = arith.constant 0 : index
      %c0_9 = arith.constant 0 : index
      %11 = vector.load %arg2[%c0_8, %c0_9] : memref<32x32xbf16, #tpu.memory_space<vmem>>, vector<32x32xbf16>
      %12 = arith.extf %11 : vector<32x32xbf16> to vector<32x32xf32>
      %cst_10 = arith.constant dense<0.000000e+00> : vector<32xf32>
      %13 = vector.multi_reduction <add>, %12, %cst_10 [1] : vector<32x32xf32> to vector<32xf32>
      %14 = vector.shape_cast %13 : vector<32xf32> to vector<32x1xf32>
      %cst_11 = arith.constant 3.200000e+01 : f32
      %15 = vector.broadcast %cst_11 : f32 to vector<32x1xf32>
      %16 = arith.divf %14, %15 : vector<32x1xf32>
      %17 = vector.broadcast %16 : vector<32x1xf32> to vector<32x32xf32>
      %18 = arith.subf %12, %17 : vector<32x32xf32>
      %19 = arith.mulf %18, %18 : vector<32x32xf32>
      %cst_12 = arith.constant dense<0.000000e+00> : vector<32xf32>
      %20 = vector.multi_reduction <add>, %19, %cst_12 [1] : vector<32x32xf32> to vector<32xf32>
      %21 = vector.shape_cast %20 : vector<32xf32> to vector<32x1xf32>
      %cst_13 = arith.constant 3.200000e+01 : f32
      %22 = vector.broadcast %cst_13 : f32 to vector<32x1xf32>
      %23 = arith.divf %21, %22 : vector<32x1xf32>
      %cst_14 = arith.constant 9.99999974E-6 : f32
      %24 = vector.broadcast %cst_14 : f32 to vector<32x1xf32>
      %25 = arith.addf %23, %24 : vector<32x1xf32>
      %26 = math.rsqrt %25 : vector<32x1xf32>
      %27 = vector.broadcast %26 : vector<32x1xf32> to vector<32x32xf32>
      %28 = arith.mulf %18, %27 : vector<32x32xf32>
      %c0_15 = arith.constant 0 : index
      %c0_16 = arith.constant 0 : index
      %29 = vector.load %arg3[%c0_15, %c0_16] : memref<1x32xf32, #tpu.memory_space<vmem>>, vector<1x32xf32>
      %30 = vector.broadcast %29 : vector<1x32xf32> to vector<32x32xf32>
      %31 = arith.mulf %28, %30 : vector<32x32xf32>
      %c0_17 = arith.constant 0 : index
      %c0_18 = arith.constant 0 : index
      %32 = vector.load %arg4[%c0_17, %c0_18] : memref<1x32xf32, #tpu.memory_space<vmem>>, vector<1x32xf32>
      %33 = vector.broadcast %32 : vector<1x32xf32> to vector<32x32xf32>
      %34 = arith.addf %31, %33 : vector<32x32xf32>
      %35 = arith.truncf %34 : vector<32x32xf32> to vector<32x32xbf16>
      %c0_19 = arith.constant 0 : index
      %c0_20 = arith.constant 0 : index
      %36 = vector.load %arg8[%c0_19, %c0_20] : memref<32x32xbf16, #tpu.memory_space<vmem>>, vector<32x32xbf16>
      tpu.vector_store %arg8[%c0_19, %c0_20], %35 {strides = array<i32>} : memref<32x32xbf16, #tpu.memory_space<vmem>>, vector<32x32xbf16>,
    } else {
    }
    %c0 = arith.constant 0 : index
    %c0_1 = arith.constant 0 : index
    %3 = vector.load %arg8[%c0, %c0_1] : memref<32x32xbf16, #tpu.memory_space<vmem>>, vector<32x32xbf16>
    %c0_2 = arith.constant 0 : index
    %c0_3 = arith.constant 0 : index
    %4 = vector.load %arg5[%c0_2, %c0_3] : memref<32x48xbf16, #tpu.memory_space<vmem>>, vector<32x48xbf16>
    %cst = arith.constant dense<0.000000e+00> : vector<32x48xf32>
    %5 = tpu.matmul %3, %4, %cst {dimension_numbers = #tpu.dot_dimension_numbers<[1], [0], [0], [1], [0, 0, 1, 1], [], []>} : vector<32x32xbf16>, vector<32x48xbf16>, vector<32x48xf32> -> vector<32x48xf32>
    %c0_4 = arith.constant 0 : index
    %c0_5 = arith.constant 0 : index
    %6 = vector.load %arg6[%c0_4, %c0_5] : memref<1x48xf32, #tpu.memory_space<vmem>>, vector<1x48xf32>
    %7 = vector.broadcast %6 : vector<1x48xf32> to vector<32x48xf32>
    %8 = arith.addf %5, %7 : vector<32x48xf32>
    %9 = arith.truncf %8 : vector<32x48xf32> to vector<32x48xbf16>
    %c0_6 = arith.constant 0 : index
    %c0_7 = arith.constant 0 : index
    %10 = vector.load %arg7[%c0_6, %c0_7] : memref<32x48xbf16, #tpu.memory_space<vmem>>, vector<32x48xbf16>
    tpu.vector_store %arg7[%c0_6, %c0_7], %9 {strides = array<i32>} : memref<32x48xbf16, #tpu.memory_space<vmem>>, vector<32x48xbf16>,
    return
  }
  func.func @transform_0(%arg0: i32, %arg1: i32) -> (i32, i32) {
    %c0_i32 = arith.constant 0 : i32
    %c0_i32_0 = arith.constant 0 : i32
    return %arg0, %c0_i32 : i32, i32
  }
  func.func @transform_1(%arg0: i32, %arg1: i32) -> (i32, i32) {
    %c0_i32 = arith.constant 0 : i32
    %c0_i32_0 = arith.constant 0 : i32
    %c0_i32_1 = arith.constant 0 : i32
    return %c0_i32, %c0_i32_0 : i32, i32
  }
  func.func @transform_2(%arg0: i32, %arg1: i32) -> (i32, i32) {
    %c0_i32 = arith.constant 0 : i32
    %c0_i32_0 = arith.constant 0 : i32
    %c0_i32_1 = arith.constant 0 : i32
    return %c0_i32, %c0_i32_0 : i32, i32
  }
  func.func @transform_3(%arg0: i32, %arg1: i32) -> (i32, i32) {
    %c0_i32 = arith.constant 0 : i32
    %c0_i32_0 = arith.constant 0 : i32
    return %c0_i32, %arg1 : i32, i32
  }
  func.func @transform_4(%arg0: i32, %arg1: i32) -> (i32, i32) {
    %c0_i32 = arith.constant 0 : i32
    %c0_i32_0 = arith.constant 0 : i32
    return %c0_i32, %arg1 : i32, i32
  }
  func.func @transform_5(%arg0: i32, %arg1: i32) -> (i32, i32) {
    %c0_i32 = arith.constant 0 : i32
    return %arg0, %arg1 : i32, i32
  }
}

</mosaic_0001>

<bundles_post_ra>
// kernel: tpu_custom_call.1
= control target key start
LH: loop header
LB: loop body
LE: loop exit
PB: predicated region body
PF: predicated region fallthrough
CT: control target
= control target key end

     0   :  { %10 = vsyncpa [#allocation4], 0  ;;  %s626_s0 = inlined_call_operand.hbm [shape: bf16[32,32], index: 0, kind: input, shape index: {}]   ;;  %s627_s1 = inlined_call_operand.hbm [shape: f32[1,32], index: 1, kind: input, shape index: {}]   ;;  %s628_s2 = inlined_call_operand.hbm [shape: f32[1,32], index: 2, kind: input, shape index: {}]   ;;  %s629_s3 = inlined_call_operand.hbm [shape: bf16[32,48], index: 3, kind: input, shape index: {}]   ;;  %s630_s4 = inlined_call_operand.hbm [shape: f32[1,48], index: 4, kind: input, shape index: {}]   ;;  %s631_s5 = inlined_call_operand.hbm [shape: bf16[32,48], index: 5, kind: output, shape index: {}]  }
   0x1   :  { %11 = vsyncpa [#allocation7], 0 }
   0x2   :  { %12 = vsyncpa [#allocation10], 0 }
   0x3   :  { %13 = vsyncpa [#allocation5], 0  ;;  %s491_s18 = smov [#allocation6]   ;;  %s351_s22 = scalar_lea.hbm %s627_s1, 16 }
   0x4   :  { %s32_s19 = sshll.u32 %s491_s18, 4  ;;  %p352_p0 = scmp.ne.s32.totalorder %s627_s1, %s351_s22  ;;  %s33_s19 = int_to_ptr.vmem [resolvable:$true] %s32_s19 }
   0x5   :  { %p355_p1 = scmp.lt.u32.totalorder %s351_s22, %s627_s1 }
   0x7   :  { %p357_p2 = pnand %p355_p1, %p352_p0 }
   0x9   :  { %360 = shalt.err (!%p357_p2)
}
   0xa   :  { %s361_s27 = scalar_lea.vmem %s33_s19, 16  ;;  %s365_s28 = scalar_lea.vmem %s33_s19, 32 }
   0xb   :  { %p362_p3 = scmp.ne.s32.totalorder %s33_s19, %s361_s27  ;;  %p366_p4 = scmp.lt.s32.totalorder %s33_s19, %s33_s19 }
   0xc   :  { %p367_p5 = scmp.lt.s32.totalorder %s365_s28, %s361_s27 }
   0xe   :  { %p368_p6 = por %p367_p5, %p366_p4 }
  0x10   :  { %p369_p7 = pnand %p368_p6, %p362_p3 }
  0x12   :  { %372 = shalt.err (!%p369_p7)
}
  0x13   :  { %35 = dma.hbm_to_vmem [thread:$0]  %s627_s1, 16, %s33_s19, [#allocation7]  }
  0x14   :  { %s492_s6 = smov [#allocation9]   ;;  %s493_s8 = smov [#allocation3]  }
  0x15   :  { %s51_s7 = sshll.u32 %s492_s6, 4  ;;  %s19_s9 = sshll.u32 %s493_s8, 4  ;;  %s52_s7 = int_to_ptr.vmem [resolvable:$true] %s51_s7  ;;  %s20_s9 = int_to_ptr.vmem [resolvable:$true] %s19_s9 }
  0x16   :  { %s373_s12 = scalar_lea.hbm %s629_s3, 256 }
  0x17   :  { %p374_p8 = scmp.ne.s32.totalorder %s629_s3, %s373_s12  ;;  %p377_p9 = scmp.lt.u32.totalorder %s373_s12, %s629_s3 }
  0x19   :  { %p379_p10 = pnand %p377_p9, %p374_p8 }
  0x1b   :  { %382 = shalt.err (!%p379_p10)
}
  0x1c   :  { %s383_s1 = scalar_lea.vmem %s52_s7, 256  ;;  %p388_p12 = scmp.lt.s32.totalorder %s52_s7, %s52_s7 }
  0x1d   :  { %p384_p11 = scmp.ne.s32.totalorder %s52_s7, %s383_s1  ;;  %p389_p13 = scmp.lt.s32.totalorder %s383_s1, %s383_s1 }
  0x1f   :  { %p390_p0 = por %p389_p13, %p388_p12 }
  0x21   :  { %p391_p1 = pnand %p390_p0, %p384_p11 }
  0x23   :  { %394 = shalt.err (!%p391_p1)
}
  0x24   :  { %s494_s17 = smov 64   ;;  %s495_s18 = smov 4  }
  0x25   :  { %57 = dma.hbm_to_vmem [thread:$0]  %s629_s3, 256, %s52_s7, [#allocation10], %s494_s17, %s494_s17, %s495_s18  }
  0x26   :  { %s395_s23 = scalar_lea.hbm %s626_s0, 256 }
  0x27   :  { %p396_p2 = scmp.ne.s32.totalorder %s626_s0, %s395_s23  ;;  %p399_p3 = scmp.lt.u32.totalorder %s395_s23, %s626_s0 }
  0x29   :  { %p401_p4 = pnand %p399_p3, %p396_p2 }
  0x2b   :  { %404 = shalt.err (!%p401_p4)
}
  0x2c   :  { %s405_s28 = scalar_lea.vmem %s20_s9, 256  ;;  %p410_p6 = scmp.lt.s32.totalorder %s20_s9, %s20_s9 }
  0x2d   :  { %p406_p5 = scmp.ne.s32.totalorder %s20_s9, %s405_s28  ;;  %p411_p7 = scmp.lt.s32.totalorder %s405_s28, %s405_s28 }
  0x2f   :  { %p412_p8 = por %p411_p7, %p410_p6 }
  0x31   :  { %p413_p9 = pnand %p412_p8, %p406_p5 }
  0x33   :  { %416 = shalt.err (!%p413_p9)
}
  0x34   :  { %25 = dma.hbm_to_vmem [thread:$0]  %s626_s0, 256, %s20_s9, [#allocation4], %s494_s17, %s494_s17, %s495_s18  }
  0x35   :  { %s496_s30 = smov [#allocation8]   ;;  %s497_s7 = smov [#allocation11]  }
  0x36   :  { %s42_s6 = sshll.u32 %s496_s30, 4  ;;  %s64_s8 = sshll.u32 %s497_s7, 4  ;;  %s43_s6 = int_to_ptr.vmem [resolvable:$true] %s42_s6  ;;  %s65_s8 = int_to_ptr.vmem [resolvable:$true] %s64_s8 }
  0x37   :  { %s417_s12 = scalar_lea.hbm %s628_s2, 16 }
  0x38   :  { %p418_p10 = scmp.ne.s32.totalorder %s628_s2, %s417_s12  ;;  %p421_p11 = scmp.lt.u32.totalorder %s417_s12, %s628_s2 }
  0x3a   :  { %p423_p12 = pnand %p421_p11, %p418_p10 }
  0x3c   :  { %426 = shalt.err (!%p423_p12)
}
  0x3d   :  { %s427_s0 = scalar_lea.vmem %s43_s6, 16  ;;  %s431_s9 = scalar_lea.vmem %s43_s6, 32 }
  0x3e   :  { %p428_p13 = scmp.ne.s32.totalorder %s43_s6, %s427_s0  ;;  %p432_p0 = scmp.lt.s32.totalorder %s43_s6, %s43_s6 }
  0x3f   :  { %p433_p1 = scmp.lt.s32.totalorder %s431_s9, %s427_s0 }
  0x41   :  { %p434_p2 = por %p433_p1, %p432_p0 }
  0x43   :  { %p435_p3 = pnand %p434_p2, %p428_p13 }
  0x45   :  { %438 = shalt.err (!%p435_p3)
}
  0x46   :  { %45 = dma.hbm_to_vmem [thread:$0]  %s628_s2, 16, %s43_s6, [#allocation7]  }
  0x47   :  { %s439_s22 = scalar_lea.hbm %s630_s4, 16 }
  0x48   :  { %p440_p4 = scmp.ne.s32.totalorder %s630_s4, %s439_s22  ;;  %p443_p5 = scmp.lt.u32.totalorder %s439_s22, %s630_s4 }
  0x4a   :  { %p445_p6 = pnand %p443_p5, %p440_p4 }
  0x4c   :  { %448 = shalt.err (!%p445_p6)
}
  0x4d   :  { %s449_s27 = scalar_lea.vmem %s65_s8, 16  ;;  %s453_s28 = scalar_lea.vmem %s65_s8, 32 }
  0x4e   :  { %p450_p7 = scmp.ne.s32.totalorder %s65_s8, %s449_s27  ;;  %p454_p8 = scmp.lt.s32.totalorder %s65_s8, %s65_s8 }
  0x4f   :  { %p455_p9 = scmp.lt.s32.totalorder %s453_s28, %s449_s27 }
  0x51   :  { %p456_p10 = por %p455_p9, %p454_p8 }
  0x53   :  { %p457_p11 = pnand %p456_p10, %p450_p7 }
  0x55   :  { %460 = shalt.err (!%p457_p11)
}
  0x56   :  { %67 = dma.hbm_to_vmem [thread:$0]  %s630_s4, 16, %s65_s8, [#allocation10]  }
  0x57   :  { %483 = dma.done.wait [#allocation4], 256  }
  0x58   :  { %484 = vsyncadd [#allocation4], 4294967040 }
  0x59   :  { %485 = dma.done.wait [#allocation7], 32  }
  0x5a   :  { %486 = vsyncadd [#allocation7], 4294967264 }
  0x5b   :  { %487 = dma.done.wait [#allocation10], 272  }
  0x5c   :  { %488 = vsyncadd [#allocation10], 4294967024  ;;  %v313_v0 = vld [vmem:[#allocation3] sm:$0xff]   ;;  %vm96_vm0 = vcmask 261120   ;;  %v320_v1 = vld [vmem:[#allocation3 + $0x8] sm:$0xff]   ;;  %vm273_vm1 = vcmask 388096  }
  0x5d   :  { %v314_v2 = vunpack.c.l.bf16 %v313_v0  ;;  %v318_v3 = vunpack.c.l.bf16 %v320_v1  ;;  %v315_v4 = vunpack.c.h.bf16 %v313_v0  ;;  %v319_v5 = vunpack.c.h.bf16 %v320_v1  ;;  %v341_v30 = vld [vmem:[#allocation9] sm:$0xff]   ;;  %v342_v31 = vld [vmem:[#allocation9 + $0x8] sm:$0xff]   ;;  %v297_v46 = vld [vmem:[#allocation6] ss:$0 sm:$0xff]  ;;  %s498_s4 = smov [#allocation12]  }
  0x5e   :  { %325 = vmatprep.subr.bf16.mxu0 %v341_v30  ;;  %v298_v51 = vld [vmem:[#allocation8] ss:$0 sm:$0xff]  ;;  %s283_s29 = sshll.u32 %s498_s4, 4  ;;  %s284_s29 = int_to_ptr.vmem [resolvable:$true] %s283_s29 }
  0x5f   :  { %v97_v6 = vsel %vm96_vm0, %v314_v2, 0.0  ;;  %v103_v7 = vsel %vm96_vm0, %v318_v3, 0.0  ;;  %v100_v8 = vsel %vm96_vm0, %v315_v4, 0.0  ;;  %v106_v9 = vsel %vm96_vm0, %v319_v5, 0.0  ;;  %326 = vmatpush3.bf16.msra.mxu0 %v341_v30  ;;  %s461_s30 = scalar_lea.vmem %s284_s29, 256  ;;  %p466_p13 = scmp.lt.s32.totalorder %s284_s29, %s284_s29 }
  0x60   :  { %98 = vadd.xlane.f32.xlu0 %v97_v6  ;;  %104 = vadd.xlane.f32.xlu1 %v103_v7  ;;  %p462_p12 = scmp.ne.s32.totalorder %s284_s29, %s461_s30  ;;  %p467_p0 = scmp.lt.s32.totalorder %s461_s30, %s461_s30 }
  0x61   :  { %327 = vmatprep.subr.bf16.mxu0 %v342_v31 }
  0x62   :  { %p468_p1 = por %p467_p0, %p466_p13 }
  0x63   :  { %328 = vmatpush3.bf16.msra.mxu0 %v342_v31 }
  0x64   :  { %101 = vadd.xlane.f32.xlu0 %v100_v8  ;;  %107 = vadd.xlane.f32.xlu1 %v106_v9  ;;  %p469_p2 = pnand %p468_p1, %p462_p12 }
  0xed   :  { %v99_v10 = vpop.xlane.xlu0 %98  ;;  %v105_v11 = vpop.xlane.xlu1 %104 }
  0xee   :  { %v110_v12 = vmul.f32 0.03125, %v99_v10  ;;  %v112_v13 = vmul.f32 0.03125, %v105_v11 }
  0xf0   :  { %v114_v14 = vsub.f32 %v314_v2, %v110_v12  ;;  %v116_v15 = vsub.f32 %v318_v3, %v112_v13  ;;  %v299_v2 = vld [vmem:[#allocation11] ss:$0 sm:$0xff] }
  0xf1   :  { %v102_v16 = vpop.xlane.xlu0 %101  ;;  %v108_v17 = vpop.xlane.xlu1 %107 }
  0xf2   :  { %v111_v18 = vmul.f32 0.03125, %v102_v16  ;;  %v113_v19 = vmul.f32 0.03125, %v108_v17  ;;  %v118_v20 = vmul.f32 %v114_v14, %v114_v14  ;;  %v120_v21 = vmul.f32 %v116_v15, %v116_v15 }
  0xf4   :  { %v115_v22 = vsub.f32 %v315_v4, %v111_v18  ;;  %v117_v23 = vsub.f32 %v319_v5, %v113_v19  ;;  %v122_v24 = vsel %vm96_vm0, %v118_v20, 0.0  ;;  %v128_v25 = vsel %vm96_vm0, %v120_v21, 0.0 }
  0xf5   :  { %123 = vadd.xlane.f32.xlu0 %v122_v24 }
  0xf6   :  { %v119_v26 = vmul.f32 %v115_v22, %v115_v22  ;;  %v121_v27 = vmul.f32 %v117_v23, %v117_v23 }
  0xf8   :  { %v125_v28 = vsel %vm96_vm0, %v119_v26, 0.0  ;;  %v131_v29 = vsel %vm96_vm0, %v121_v27, 0.0 }
  0xf9   :  { %129 = vadd.xlane.f32.xlu0 %v128_v25  ;;  %126 = vadd.xlane.f32.xlu1 %v125_v28 }
  0xfd   :  { %132 = vadd.xlane.f32.xlu1 %v131_v29 }
 0x182   :  { %v124_v32 = vpop.xlane.xlu0 %123 }
 0x183   :  { %v134_v33 = vmul.f32 0.03125, %v124_v32 }
 0x185   :  { %v138_v34 = vadd.f32 1e-05, %v134_v33 }
 0x186   :  { %v127_v35 = vpop.xlane.xlu1 %126  ;;  %v130_v36 = vpop.xlane.xlu0 %129 }
 0x187   :  { %343 = vrsqrt.f32 %v138_v34  ;;  %v135_v37 = vmul.f32 0.03125, %v127_v35  ;;  %v136_v38 = vmul.f32 0.03125, %v130_v36 }
 0x189   :  { %v139_v39 = vadd.f32 1e-05, %v135_v37  ;;  %v140_v40 = vadd.f32 1e-05, %v136_v38 }
 0x18a   :  { %v133_v41 = vpop.xlane.xlu1 %132 }
 0x18b   :  { %345 = vrsqrt.f32 %v139_v39  ;;  %v137_v42 = vmul.f32 0.03125, %v133_v41 }
 0x18c   :  { %347 = vrsqrt.f32 %v140_v40 }
 0x18d   :  { %v141_v43 = vadd.f32 1e-05, %v137_v42 }
 0x18f   :  { %349 = vrsqrt.f32 %v141_v43 }
 0x191   :  { %v344_v44 = vpop.eup %343 }
 0x192   :  { %v146_v45 = vmul.f32 %v344_v44, %v114_v14 }
 0x194   :  { %v157_v49 = vmul.f32 %v297_v46, %v146_v45 }
 0x195   :  { %v346_v47 = vpop.eup %345 }
 0x196   :  { %v348_v48 = vpop.eup %347  ;;  %v147_v50 = vmul.f32 %v346_v47, %v115_v22  ;;  %v168_v55 = vadd.f32 %v298_v51, %v157_v49 }
 0x197   :  { %v148_v52 = vmul.f32 %v348_v48, %v116_v15 }
 0x198   :  { %v158_v53 = vmul.f32 %v297_v46, %v147_v50 }
 0x199   :  { %v350_v54 = vpop.eup %349  ;;  %v159_v57 = vmul.f32 %v297_v46, %v148_v52 }
 0x19a   :  { %v169_v56 = vadd.f32 %v298_v51, %v158_v53  ;;  %v149_v58 = vmul.f32 %v350_v54, %v117_v23 }
 0x19b   :  { %v170_v61 = vadd.f32 %v298_v51, %v159_v57 }
 0x19c   :  { %v172_v59 = vpack.c.bf16 %v169_v56, %v168_v55  ;;  %v160_v60 = vmul.f32 %v297_v46, %v149_v58 }
 0x19e   :  { %174 = vst.msk [vmem:[#allocation2] sm:$0xff] %vm96_vm0, %v172_v59  ;;  %v171_v62 = vadd.f32 %v298_v51, %v160_v60 }
 0x1a0   :  { %v173_v63 = vpack.c.bf16 %v171_v62, %v170_v61 }
 0x1a2   :  { %175 = vst.msk [vmem:[#allocation2 + $0x8] sm:$0xff] %vm96_vm0, %v173_v63 }
 0x1a5   :  { %v176_v0 = vld [vmem:[#allocation2] sm:$0xff] }
 0x1a6   :  { %329 = vmatprep.mubr.msk.bf16.mxu0 %vm96_vm0, %v176_v0 }
 0x1a9   :  { %v177_v1 = vld [vmem:[#allocation2 + $0x8] sm:$0xff] }
 0x1aa   :  { %330 = vmatmul.mubr.msk.bf16.vlgmr.msra.gmra.mrb[0].mxu0 %vm96_vm0, %v177_v1 }
 0x27d   :  { %v331_v3 = vpop.f32.mrb[0].mxu0 }
 0x27e   :  { %v251_v4 = vadd.f32 %v331_v3, %v299_v2  ;;  %v242_v5 = vpop.f32.mrb[1].mxu0 }
 0x27f   :  { %v243_v6 = vadd.f32 %v299_v2, %v242_v5  ;;  %v332_v7 = vpop.f32.mrb[2].mxu0 }
 0x280   :  { %v310_v8 = vpack.c.bf16 %v251_v4, %v251_v4  ;;  %v254_v9 = vadd.f32 %v332_v7, %v299_v2  ;;  %v245_v10 = vpop.f32.mrb[3].mxu0 }
 0x281   :  { %v308_v11 = vpack.c.bf16 %v243_v6, %v243_v6  ;;  %v246_v12 = vadd.f32 %v299_v2, %v245_v10 }
 0x282   :  { %276 = vst.msk [vmem:[#allocation12 + $0x8] sm:$0xf] %vm273_vm1, %v310_v8  ;;  %v311_v13 = vpack.c.bf16 %v254_v9, %v254_v9 }
 0x283   :  { %274 = vst.msk [vmem:[#allocation12] sm:$0xf] %vm273_vm1, %v308_v11  ;;  %v309_v14 = vpack.c.bf16 %v246_v12, %v246_v12 }
 0x284   :  { %277 = vst.msk [vmem:[#allocation12 + $0xc] sm:$0xf] %vm273_vm1, %v311_v13 }
 0x285   :  { %275 = vst.msk [vmem:[#allocation12 + $0x4] sm:$0xf] %vm273_vm1, %v309_v14 }
 0x286   :  { %472 = shalt.err (!%p469_p2)
}
 0x287   :  { %s473_s8 = scalar_lea.hbm %s631_s5, 256 }
 0x288   :  { %p474_p3 = scmp.ne.s32.totalorder %s631_s5, %s473_s8  ;;  %p477_p4 = scmp.lt.u32.totalorder %s473_s8, %s631_s5 }
 0x28a   :  { %p479_p5 = pnand %p477_p4, %p474_p3 }
 0x28c   :  { %482 = shalt.err (!%p479_p5)
}
 0x28d   :  { %289 = dma.vmem_to_hbm [thread:$0]  %s284_s29, 256, %s631_s5, [#allocation5], %s494_s17, %s494_s17, %s495_s18  }
 0x28e   :  { %489 = dma.done.wait [#allocation5], 256  }
 0x28f   :  { %490 = vsyncadd [#allocation5], 4294967040 }
 0x290   :  { %293 = vsyncpa [#allocation4], 1 }
 0x291   :  { %294 = vsyncpa [#allocation7], 1 }
 0x292   :  { %295 = vsyncpa [#allocation10], 1 }
 0x293   :  { %296 = vsyncpa [#allocation5], 1 }

</bundles_post_ra>
